<compile_context>
chip_gen: v7x
topology: tpu7x:2x2x1
jax: 0.10.0
libtpu: 0.0.40
codegen_flags: <defaults>
</compile_context>

<pallas_src>
import functools
import math

import numpy as np
import jax
import jax.numpy as jnp
from jax.experimental import pallas as pl
from jax.experimental.pallas import tpu as pltpu


# ----------------------------------------------------------------------------
# Tiled matmul kernels (bf16 operands, f32 accumulator, fused affine / ReLU)
# ----------------------------------------------------------------------------

def _matmul_kernel(x_ref, w_ref, o_ref, acc_ref, *, relu):
    @pl.when(pl.program_id(2) == 0)
    def _():
        acc_ref[...] = jnp.zeros_like(acc_ref)

    acc_ref[...] += jnp.dot(x_ref[...], w_ref[...],
                            preferred_element_type=jnp.float32)

    @pl.when(pl.program_id(2) == pl.num_programs(2) - 1)
    def _():
        acc = acc_ref[...]
        if relu:
            acc = jnp.maximum(acc, 0.0)
        o_ref[...] = acc.astype(o_ref.dtype)


def _matmul_affine_kernel(x_ref, w_ref, scale_ref, shift_ref, o_ref, acc_ref,
                          *, relu):
    @pl.when(pl.program_id(2) == 0)
    def _():
        acc_ref[...] = jnp.zeros_like(acc_ref)

    acc_ref[...] += jnp.dot(x_ref[...], w_ref[...],
                            preferred_element_type=jnp.float32)

    @pl.when(pl.program_id(2) == pl.num_programs(2) - 1)
    def _():
        acc = acc_ref[...] * scale_ref[...] + shift_ref[...]   # f32 epilogue
        if relu:
            acc = jnp.maximum(acc, 0.0)
        o_ref[...] = acc.astype(o_ref.dtype)


def _round_up(v, m):
    return (v + m - 1) // m * m


def pallas_matmul(x, w, scale=None, shift=None, relu=False,
                  out_dtype=jnp.float32, tm=256, tn=512, tk=1024):
    """(M,K) @ (K,N) with optional fused per-channel affine + ReLU.

    Operands are cast to bf16 at the kernel boundary (MXU-native), accumulation
    is f32 in a VMEM scratch carried across the K grid axis.
    """
    M, K = x.shape
    K2, N = w.shape
    assert K == K2
    # Clamp tiles to the (aligned) problem size; keep MXU / lane alignment.
    tm = min(tm, _round_up(M, 16))     # bf16 sublane packing: multiples of 16
    tn = min(tn, _round_up(N, 128))    # lane-dense output stores
    tk = min(tk, _round_up(K, 128))
    Mp, Kp, Np = _round_up(M, tm), _round_up(K, tk), _round_up(N, tn)

    xp = jnp.pad(x.astype(jnp.bfloat16), ((0, Mp - M), (0, Kp - K)))
    wp = jnp.pad(w.astype(jnp.bfloat16), ((0, Kp - K), (0, Np - N)))
    grid = (Mp // tm, Np // tn, Kp // tk)

    cparams = pltpu.CompilerParams(
        dimension_semantics=("parallel", "parallel", "arbitrary"),
        vmem_limit_bytes=32 * 1024 * 1024,
    )

    if scale is None and shift is None:
        out = pl.pallas_call(
            functools.partial(_matmul_kernel, relu=relu),
            out_shape=jax.ShapeDtypeStruct((Mp, Np), out_dtype),
            grid_spec=pltpu.PrefetchScalarGridSpec(
                num_scalar_prefetch=0,
                grid=grid,
                in_specs=[
                    pl.BlockSpec((tm, tk), lambda i, j, k: (i, k)),
                    pl.BlockSpec((tk, tn), lambda i, j, k: (k, j)),
                ],
                out_specs=pl.BlockSpec((tm, tn), lambda i, j, k: (i, j)),
                scratch_shapes=[pltpu.VMEM((tm, tn), jnp.float32)],
            ),
            compiler_params=cparams,
        )(xp, wp)
    else:
        if scale is None:
            scale = jnp.ones((N,), jnp.float32)
        if shift is None:
            shift = jnp.zeros((N,), jnp.float32)
        scale_p = jnp.pad(scale.reshape(1, N).astype(jnp.float32),
                          ((0, 0), (0, Np - N)))
        shift_p = jnp.pad(shift.reshape(1, N).astype(jnp.float32),
                          ((0, 0), (0, Np - N)))
        out = pl.pallas_call(
            functools.partial(_matmul_affine_kernel, relu=relu),
            out_shape=jax.ShapeDtypeStruct((Mp, Np), out_dtype),
            grid_spec=pltpu.PrefetchScalarGridSpec(
                num_scalar_prefetch=0,
                grid=grid,
                in_specs=[
                    pl.BlockSpec((tm, tk), lambda i, j, k: (i, k)),
                    pl.BlockSpec((tk, tn), lambda i, j, k: (k, j)),
                    pl.BlockSpec((1, tn), lambda i, j, k: (0, j)),
                    pl.BlockSpec((1, tn), lambda i, j, k: (0, j)),
                ],
                out_specs=pl.BlockSpec((tm, tn), lambda i, j, k: (i, j)),
                scratch_shapes=[pltpu.VMEM((tm, tn), jnp.float32)],
            ),
            compiler_params=cparams,
        )(xp, wp, scale_p, shift_p)
    return out[:M, :N]


# ----------------------------------------------------------------------------
# Fused TemporalConv: conv1(K5)+BN+ReLU -> pool2 -> conv2(K5)+BN+ReLU -> pool2
# One pallas_call, one grid step per batch element, im2col done in-kernel as
# K shifted matmuls against a VMEM-resident activation tile.
# ----------------------------------------------------------------------------

def _temporal_conv_kernel(x_ref, w1_ref, s1_ref, b1_ref, w2_ref, s2_ref, b2_ref,
                          o_ref, *, K):
    def maxpool2(h):
        # MaxPool1d(kernel=2, ceil_mode=False) over time, fully unrolled
        # (static shapes; avoids in-kernel strided/reshape relayouts).
        tp = h.shape[0] // 2
        rows = [jnp.maximum(h[2 * t:2 * t + 1, :], h[2 * t + 1:2 * t + 2, :])
                for t in range(tp)]
        return jnp.concatenate(rows, axis=0)

    def conv_bn_relu(h, w_ref, s_ref, b_ref):
        # Conv1d(kernel=K, stride=1, pad=0) + eval-mode BatchNorm1d + ReLU.
        t_out = h.shape[0] - K + 1
        acc = jnp.zeros((t_out, w_ref.shape[2]), jnp.float32)
        for k in range(K):                       # in-kernel im2col: K MXU pushes
            acc += jnp.dot(h[k:k + t_out, :].astype(jnp.bfloat16), w_ref[k],
                           preferred_element_type=jnp.float32)
        return jnp.maximum(acc * s_ref[...] + b_ref[...], 0.0)

    x = x_ref[0]                                  # (T_max, Cin) f32, VMEM-resident
    h = conv_bn_relu(x, w1_ref, s1_ref, b1_ref)   # K5 + BN + ReLU
    h = maxpool2(h)                               # P2
    h = conv_bn_relu(h, w2_ref, s2_ref, b2_ref)   # K5 + BN + ReLU
    h = maxpool2(h)                               # P2
    o_ref[0] = h.astype(o_ref.dtype)


def temporal_conv(padded, w1, b1, bn1, w2, b2, bn2, K=5, eps=1e-5):
    """padded: (B, T_max, Cin) float32; w: PyTorch Conv1d layout (Cout, Cin, K)."""
    B, T, Cin = padded.shape
    H = w1.shape[0]
    T1 = T - K + 1
    T1p = T1 // 2
    T2 = T1p - K + 1
    T2p = T2 // 2
    assert T2p >= 1, "sequence too short for conv_type=2 TemporalConv"

    w1_t = jnp.transpose(w1, (2, 1, 0)).astype(jnp.bfloat16)   # (K, Cin, H)
    w2_t = jnp.transpose(w2, (2, 1, 0)).astype(jnp.bfloat16)

    def fold(bias, bn):   # fold conv bias + eval-mode BN into scale/shift
        gamma, beta, mean, var = bn
        s = gamma * jax.lax.rsqrt(var + eps)
        return (s.reshape(1, H).astype(jnp.float32),
                ((bias - mean) * s + beta).reshape(1, H).astype(jnp.float32))

    s1, sh1 = fold(b1, bn1)
    s2, sh2 = fold(b2, bn2)

    return pl.pallas_call(
        functools.partial(_temporal_conv_kernel, K=K),
        out_shape=jax.ShapeDtypeStruct((B, T2p, H), jnp.bfloat16),
        grid_spec=pltpu.PrefetchScalarGridSpec(
            num_scalar_prefetch=0,
            grid=(B,),
            in_specs=[
                pl.BlockSpec((1, T, Cin), lambda b: (b, 0, 0)),
                pl.BlockSpec((K, Cin, H), lambda b: (0, 0, 0)),
                pl.BlockSpec((1, H), lambda b: (0, 0)),
                pl.BlockSpec((1, H), lambda b: (0, 0)),
                pl.BlockSpec((K, Cin, H), lambda b: (0, 0, 0)),
                pl.BlockSpec((1, H), lambda b: (0, 0)),
                pl.BlockSpec((1, H), lambda b: (0, 0)),
            ],
            out_specs=pl.BlockSpec((1, T2p, H), lambda b: (b, 0, 0)),
        ),
        compiler_params=pltpu.CompilerParams(
            dimension_semantics=("parallel",),
            vmem_limit_bytes=32 * 1024 * 1024,
        ),
    )(padded.astype(jnp.float32), w1_t, s1, sh1, w2_t, s2, sh2)


# ----------------------------------------------------------------------------
# Model glue (plain JAX around the Pallas kernels)
# ----------------------------------------------------------------------------

def pad_frames(feats, lengths):
    """pad_sequence(batch_first=True, padding_value=0) via one vectorized gather
    (replaces the per-sequence dynamic-update-slice loop)."""
    B = len(lengths)
    T_max = max(lengths)
    lengths_arr = jnp.asarray(lengths, jnp.int32)
    offsets = jnp.asarray(np.concatenate([[0], np.cumsum(lengths)[:-1]]),
                          jnp.int32)
    t = jnp.arange(T_max, dtype=jnp.int32)
    idx = offsets[:, None] + t[None, :]                       # (B, T_max)
    valid = t[None, :] < lengths_arr[:, None]
    idx = jnp.where(valid, idx, 0)
    padded = jnp.take(feats, idx.reshape(-1), axis=0).reshape(B, T_max, -1)
    return jnp.where(valid[:, :, None], padded, 0.0)


def v_encoder(x, params, embed_scale, eps=1e-5):
    """V_encoder: Linear + eval-mode BatchNorm1d + ReLU, with embed_scale folded
    through the ReLU (embed_scale > 0 so c*relu(z) == relu(c*z))."""
    B, T, C = x.shape
    E = params["venc_w"].shape[1]
    s = params["venc_bn_gamma"] * jax.lax.rsqrt(params["venc_bn_var"] + eps)
    shift = (params["venc_b"] - params["venc_bn_mean"]) * s + params["venc_bn_beta"]
    s = s * embed_scale
    shift = shift * embed_scale
    y = pallas_matmul(x.reshape(B * T, C), params["venc_w"],
                      scale=s, shift=shift, relu=True, out_dtype=jnp.bfloat16)
    return y.reshape(B, T, E)


def mbart_standin(params, inputs_embeds, attention_mask, labels):
    """TODO(synk): pretrained MBartForConditionalGeneration (+LoRA adapters) is
    not reproducible in-script; encoder/decoder are per-token linear stand-ins
    with a masked-mean cross-attention surrogate, followed by lm_head."""
    B, T, E = inputs_embeds.shape
    enc = pallas_matmul(inputs_embeds.reshape(B * T, E), params["enc_w"],
                        out_dtype=jnp.bfloat16).reshape(B, T, E)
    mask = attention_mask.astype(jnp.float32)
    denom = jnp.maximum(mask.sum(axis=1, keepdims=True), 1.0)
    context = (enc.astype(jnp.float32) * mask[:, :, None]).sum(axis=1) / denom

    # TODO(synk): MBart's shift_tokens_right rotates the last non-pad token to
    # position 0; approximated with a plain right shift + decoder_start id.
    start = jnp.full((labels.shape[0], 1), params["decoder_start_id"],
                     labels.dtype)
    dec_in = jnp.concatenate([start, labels[:, :-1]], axis=1)
    L = dec_in.shape[1]
    dec_emb = jnp.take(params["dec_tok_emb"], dec_in, axis=0)      # (B, L, E)
    dec_h_in = dec_emb + context[:, None, :]
    dec_h = pallas_matmul(dec_h_in.reshape(B * L, E), params["dec_w"],
                          relu=True, out_dtype=jnp.bfloat16)
    logits = pallas_matmul(dec_h, params["lm_head_w"],
                           shift=params["final_logits_bias"],
                           out_dtype=jnp.float32)
    return logits.reshape(B, L, -1)


def gloss_free_forward(params, src_input, tgt_input):
    frames = src_input["input_ids"]              # (F_total, 3, H, W)
    lengths = src_input["src_length_batch"]
    F_total = frames.shape[0]

    # TODO(synk): pretrained torchvision resnet18 backbone not reproducible;
    # deterministic linear projection on flattened NCHW frames (tiled matmul).
    feats = pallas_matmul(frames.reshape(F_total, -1), params["resnet_w"],
                          out_dtype=jnp.float32)

    padded = pad_frames(feats, lengths)          # pad_sequence(padding_value=0)

    conv_out = temporal_conv(
        padded,
        params["conv1_w"], params["conv1_b"],
        (params["bn1_gamma"], params["bn1_beta"],
         params["bn1_mean"], params["bn1_var"]),
        params["conv2_w"], params["conv2_b"],
        (params["bn2_gamma"], params["bn2_beta"],
         params["bn2_mean"], params["bn2_var"]),
    )                                            # (B, T_conv, hid) bf16

    inputs_embeds = v_encoder(conv_out, params, params["embed_scale"])
    logits = mbart_standin(params, inputs_embeds,
                           src_input["attention_mask"],
                           tgt_input["input_ids"])
    return logits


# ----------------------------------------------------------------------------
# Parameter init (scaled-down, lane-dense dims: real 512/1024/1024 -> 128)
# ----------------------------------------------------------------------------

def init_params(key, frame_flat=3 * 16 * 16, feat=128, hid=128, emb=128,
                vocab=256):
    ks = jax.random.split(key, 8)
    n = lambda k, s: 0.02 * jax.random.normal(k, s, jnp.float32)
    return {
        "resnet_w":   n(ks[0], (frame_flat, feat)),
        "conv1_w":    n(ks[1], (hid, feat, 5)),
        "conv1_b":    jnp.zeros((hid,), jnp.float32),
        "bn1_gamma":  jnp.ones((hid,), jnp.float32),
        "bn1_beta":   jnp.zeros((hid,), jnp.float32),
        "bn1_mean":   jnp.zeros((hid,), jnp.float32),
        "bn1_var":    jnp.ones((hid,), jnp.float32),
        "conv2_w":    n(ks[2], (hid, hid, 5)),
        "conv2_b":    jnp.zeros((hid,), jnp.float32),
        "bn2_gamma":  jnp.ones((hid,), jnp.float32),
        "bn2_beta":   jnp.zeros((hid,), jnp.float32),
        "bn2_mean":   jnp.zeros((hid,), jnp.float32),
        "bn2_var":    jnp.ones((hid,), jnp.float32),
        "venc_w":     n(ks[3], (hid, emb)),
        "venc_b":     jnp.zeros((emb,), jnp.float32),
        "venc_bn_gamma": jnp.ones((emb,), jnp.float32),
        "venc_bn_beta":  jnp.zeros((emb,), jnp.float32),
        "venc_bn_mean":  jnp.zeros((emb,), jnp.float32),
        "venc_bn_var":   jnp.ones((emb,), jnp.float32),
        "enc_w":      n(ks[4], (emb, emb)),
        "dec_tok_emb": n(ks[5], (vocab, emb)),
        "dec_w":      n(ks[6], (emb, emb)),
        "lm_head_w":  n(ks[7], (emb, vocab)),
        "final_logits_bias": jnp.zeros((vocab,), jnp.float32),
        "embed_scale": float(math.sqrt(emb)),   # scale_embedding=True
        "decoder_start_id": 2,
    }


if __name__ == "__main__":
    key = jax.random.PRNGKey(0)
    kp, kf, kt = jax.random.split(key, 3)
    params = init_params(kp)

    # src: B=2 videos with 24 and 20 frames of shape (3, 16, 16).
    lengths = [24, 20]
    frames = jax.random.normal(kf, (sum(lengths), 3, 16, 16), jnp.float32)
    # attention_mask over the conv-downsampled timeline (as the data pipeline
    # would provide it): L -> ((L-4)//2 - 4)//2 for conv_type=2.
    down = [((L - 4) // 2 - 4) // 2 for L in lengths]
    T_conv = ((max(lengths) - 4) // 2 - 4) // 2
    attn = jnp.asarray([[1.0 if t < d else 0.0 for t in range(T_conv)]
                        for d in down], jnp.float32)
    src_input = {"input_ids": frames, "src_length_batch": lengths,
                 "attention_mask": attn}

    # tgt: B=2 token sequences of length 8, vocab 256.
    tgt_ids = jax.random.randint(kt, (2, 8), 1, 256)
    tgt_input = {"input_ids": tgt_ids,
                 "attention_mask": jnp.ones((2, 8), jnp.float32)}

    logits = gloss_free_forward(params, src_input, tgt_input)
    jax.block_until_ready(logits)

    assert logits.shape == (2, 8, 256), logits.shape
    assert bool(jnp.all(jnp.isfinite(logits)))
    print("KERNEL_OK")
</pallas_src>

<mosaic_0001>
module attributes {stable_mosaic.version = 11 : i64} {
  func.func @_matmul_kernel(%arg0: i32, %arg1: i32, %arg2: i32, %arg3: memref<48x768xbf16, #tpu.memory_space<vmem>>, %arg4: memref<768x128xbf16, #tpu.memory_space<vmem>>, %arg5: memref<48x128xf32, #tpu.memory_space<vmem>>, %arg6: memref<48x128xf32, #tpu.memory_space<vmem>>) attributes {dimension_semantics = [#tpu.dimension_semantics<parallel>, #tpu.dimension_semantics<parallel>, #tpu.dimension_semantics<arbitrary>], iteration_bounds = array<i64: 1, 1, 1>, scalar_prefetch = 0 : i64, scratch_operands = 1 : i64, tpu.core_type = #tpu.core_type<tc>, window_params = [{transform_indices = @transform_0, window_bounds = array<i64: 48, 768>}, {transform_indices = @transform_1, window_bounds = array<i64: 768, 128>}, {transform_indices = @transform_2, window_bounds = array<i64: 48, 128>}]} {
    %c0_i32 = arith.constant 0 : i32
    %0 = arith.cmpi eq, %arg2, %c0_i32 : i32
    %1 = arith.extui %0 : i1 to i32
    %c0_i32_0 = arith.constant 0 : i32
    %2 = arith.cmpi ne, %1, %c0_i32_0 : i32
    scf.if %2 {
      %cst_10 = arith.constant 0.000000e+00 : f32
      %12 = vector.broadcast %cst_10 : f32 to vector<48x128xf32>
      %c0_11 = arith.constant 0 : index
      %c0_12 = arith.constant 0 : index
      %13 = vector.load %arg6[%c0_11, %c0_12] : memref<48x128xf32, #tpu.memory_space<vmem>>, vector<48x128xf32>
      tpu.vector_store %arg6[%c0_11, %c0_12], %12 {strides = array<i32>} : memref<48x128xf32, #tpu.memory_space<vmem>>, vector<48x128xf32>,
    } else {
    }
    %c0 = arith.constant 0 : index
    %c0_1 = arith.constant 0 : index
    %3 = vector.load %arg6[%c0, %c0_1] : memref<48x128xf32, #tpu.memory_space<vmem>>, vector<48x128xf32>
    %c0_2 = arith.constant 0 : index
    %c0_3 = arith.constant 0 : index
    %4 = vector.load %arg3[%c0_2, %c0_3] : memref<48x768xbf16, #tpu.memory_space<vmem>>, vector<48x768xbf16>
    %c0_4 = arith.constant 0 : index
    %c0_5 = arith.constant 0 : index
    %5 = vector.load %arg4[%c0_4, %c0_5] : memref<768x128xbf16, #tpu.memory_space<vmem>>, vector<768x128xbf16>
    %cst = arith.constant dense<0.000000e+00> : vector<48x128xf32>
    %6 = tpu.matmul %4, %5, %cst {dimension_numbers = #tpu.dot_dimension_numbers<[1], [0], [0], [1], [0, 0, 1, 1], [], []>} : vector<48x768xbf16>, vector<768x128xbf16>, vector<48x128xf32> -> vector<48x128xf32>
    %7 = arith.addf %3, %6 : vector<48x128xf32>
    %c0_6 = arith.constant 0 : index
    %c0_7 = arith.constant 0 : index
    %8 = vector.load %arg6[%c0_6, %c0_7] : memref<48x128xf32, #tpu.memory_space<vmem>>, vector<48x128xf32>
    tpu.vector_store %arg6[%c0_6, %c0_7], %7 {strides = array<i32>} : memref<48x128xf32, #tpu.memory_space<vmem>>, vector<48x128xf32>,
    %c0_i32_8 = arith.constant 0 : i32
    %9 = arith.cmpi eq, %arg2, %c0_i32_8 : i32
    %10 = arith.extui %9 : i1 to i32
    %c0_i32_9 = arith.constant 0 : i32
    %11 = arith.cmpi ne, %10, %c0_i32_9 : i32
    scf.if %11 {
      %c0_10 = arith.constant 0 : index
      %c0_11 = arith.constant 0 : index
      %12 = vector.load %arg6[%c0_10, %c0_11] : memref<48x128xf32, #tpu.memory_space<vmem>>, vector<48x128xf32>
      %c0_12 = arith.constant 0 : index
      %c0_13 = arith.constant 0 : index
      %13 = vector.load %arg5[%c0_12, %c0_13] : memref<48x128xf32, #tpu.memory_space<vmem>>, vector<48x128xf32>
      tpu.vector_store %arg5[%c0_12, %c0_13], %12 {strides = array<i32>} : memref<48x128xf32, #tpu.memory_space<vmem>>, vector<48x128xf32>,
    } else {
    }
    return
  }
  func.func @transform_0(%arg0: i32, %arg1: i32, %arg2: i32) -> (i32, i32) {
    %c0_i32 = arith.constant 0 : i32
    return %arg0, %arg2 : i32, i32
  }
  func.func @transform_1(%arg0: i32, %arg1: i32, %arg2: i32) -> (i32, i32) {
    %c0_i32 = arith.constant 0 : i32
    return %arg2, %arg1 : i32, i32
  }
  func.func @transform_2(%arg0: i32, %arg1: i32, %arg2: i32) -> (i32, i32) {
    %c0_i32 = arith.constant 0 : i32
    return %arg0, %arg1 : i32, i32
  }
}

</mosaic_0001>

<bundles_post_ra>
// kernel: tpu_custom_call.1
= control target key start
LH: loop header
LB: loop body
LE: loop exit
PB: predicated region body
PF: predicated region fallthrough
CT: control target
= control target key end

     0   :  { %7 = vsyncpa [#allocation4], 0  ;;  %s1165_s0 = inlined_call_operand.hbm [shape: bf16[48,768], index: 0, kind: input, shape index: {}]   ;;  %s1166_s1 = inlined_call_operand.hbm [shape: bf16[768,128], index: 1, kind: input, shape index: {}]   ;;  %s1167_s2 = inlined_call_operand.hbm [shape: f32[48,128], index: 2, kind: output, shape index: {}]  }
   0x1   :  { %8 = vsyncpa [#allocation7], 0 }
   0x2   :  { %9 = vsyncpa [#allocation5], 0  ;;  %s1105_s9 = smov [#allocation3]   ;;  %s1033_s13 = scalar_lea.hbm %s1165_s0, 2304 }
   0x3   :  { %s15_s10 = sshll.u32 %s1105_s9, 4  ;;  %p1034_p0 = scmp.ne.s32.totalorder %s1165_s0, %s1033_s13  ;;  %s16_s10 = int_to_ptr.vmem [resolvable:$true] %s15_s10 }
   0x4   :  { %p1037_p1 = scmp.lt.u32.totalorder %s1033_s13, %s1165_s0 }
   0x6   :  { %p1039_p2 = pnand %p1037_p1, %p1034_p0 }
   0x8   :  { %1042 = shalt.err (!%p1039_p2)
}
   0x9   :  { %s1043_s18 = scalar_lea.vmem %s16_s10, 2304  ;;  %p1048_p4 = scmp.lt.s32.totalorder %s16_s10, %s16_s10 }
   0xa   :  { %p1044_p3 = scmp.ne.s32.totalorder %s16_s10, %s1043_s18  ;;  %p1049_p5 = scmp.lt.s32.totalorder %s1043_s18, %s1043_s18 }
   0xc   :  { %p1050_p6 = por %p1049_p5, %p1048_p4 }
   0xe   :  { %p1051_p7 = pnand %p1050_p6, %p1044_p3 }
  0x10   :  { %1054 = shalt.err (!%p1051_p7)
}
  0x11   :  { %s1106_s19 = smov 384   ;;  %s1107_s20 = smov 24  }
  0x12   :  { %21 = dma.hbm_to_vmem [thread:$0]  %s1165_s0, 2304, %s16_s10, [#allocation4], %s1106_s19, %s1106_s19, %s1107_s20  }
  0x13   :  { %s1108_s23 = smov [#allocation6]   ;;  %s1055_s27 = scalar_lea.hbm %s1166_s1, 6144 }
  0x14   :  { %s27_s24 = sshll.u32 %s1108_s23, 4  ;;  %p1056_p8 = scmp.ne.s32.totalorder %s1166_s1, %s1055_s27  ;;  %s28_s24 = int_to_ptr.vmem [resolvable:$true] %s27_s24 }
  0x15   :  { %p1059_p9 = scmp.lt.u32.totalorder %s1055_s27, %s1166_s1 }
  0x17   :  { %p1061_p10 = pnand %p1059_p9, %p1056_p8 }
  0x19   :  { %1064 = shalt.err (!%p1061_p10)
}
  0x1a   :  { %s1065_s4 = scalar_lea.vmem %s28_s24, 6144  ;;  %p1070_p12 = scmp.lt.s32.totalorder %s28_s24, %s28_s24 }
  0x1b   :  { %p1066_p11 = scmp.ne.s32.totalorder %s28_s24, %s1065_s4  ;;  %p1071_p13 = scmp.lt.s32.totalorder %s1065_s4, %s1065_s4 }
  0x1d   :  { %p1072_p0 = por %p1071_p13, %p1070_p12 }
  0x1f   :  { %p1073_p1 = pnand %p1072_p0, %p1066_p11 }
  0x21   :  { %1076 = shalt.err (!%p1073_p1)
}
  0x22   :  { %s1109_s0 = smov 64   ;;  %s1110_s5 = smov 4  }
  0x23   :  { %33 = dma.hbm_to_vmem [thread:$0]  %s1166_s1, 6144, %s28_s24, [#allocation7], %s1109_s0, %s1109_s0, %s1110_s5  }
  0x24   :  { %1099 = dma.done.wait [#allocation4], 2304  }
  0x25   :  { %1100 = vsyncadd [#allocation4], 4294964992 }
  0x26   :  { %1101 = dma.done.wait [#allocation7], 6144  }
  0x27   :  { %1102 = vsyncadd [#allocation7], 4294961152  ;;  %v958_v0 = vld [vmem:[#allocation6 + $0x40] sm:$0xff]   ;;  %v962_v4 = vld [vmem:[#allocation6 + $0x48] sm:$0xff]   ;;  %s1111_s1 = smov [#allocation8]  }
  0x28   :  { %v959_v1 = vld [vmem:[#allocation6 + $0xc0] sm:$0xff]   ;;  %831 = vmatprep.subr.bf16.mxu0 %v958_v0  ;;  %v963_v5 = vld [vmem:[#allocation6 + $0xc8] sm:$0xff]   ;;  %v966_v8 = vld [vmem:[#allocation6 + $0x50] sm:$0xff]   ;;  %s752_s8 = sshll.u32 %s1111_s1, 4  ;;  %s753_s8 = int_to_ptr.vmem [resolvable:$true] %s752_s8 }
  0x29   :  { %v960_v2 = vld [vmem:[#allocation6] sm:$0xff]   ;;  %865 = vmatprep.subr.bf16.mxu1 %v959_v1  ;;  %v964_v6 = vld [vmem:[#allocation6 + $0x8] sm:$0xff]   ;;  %v967_v9 = vld [vmem:[#allocation6 + $0xd0] sm:$0xff]   ;;  %s1077_s9 = scalar_lea.vmem %s753_s8, 768  ;;  %p1082_p3 = scmp.lt.s32.totalorder %s753_s8, %s753_s8 }
  0x2a   :  { %v961_v3 = vld [vmem:[#allocation6 + $0x80] sm:$0xff]   ;;  %832 = vmatpush3.bf16.msra.mxu0 %v960_v2  ;;  %v965_v7 = vld [vmem:[#allocation6 + $0x88] sm:$0xff]   ;;  %v968_v10 = vld [vmem:[#allocation6 + $0x10] sm:$0xff]   ;;  %p1078_p2 = scmp.ne.s32.totalorder %s753_s8, %s1077_s9  ;;  %p1083_p4 = scmp.lt.s32.totalorder %s1077_s9, %s1077_s9 }
  0x2b   :  { %866 = vmatpush3.bf16.msra.mxu1 %v961_v3  ;;  %833 = vmatprep.subr.bf16.mxu0 %v962_v4  ;;  %v969_v11 = vld [vmem:[#allocation6 + $0x90] sm:$0xff]   ;;  %v970_v12 = vld [vmem:[#allocation6 + $0x58] sm:$0xff]   ;;  %v974_v16 = vld [vmem:[#allocation6 + $0x60] sm:$0xff]  }
  0x2c   :  { %867 = vmatprep.subr.bf16.mxu1 %v963_v5  ;;  %v971_v13 = vld [vmem:[#allocation6 + $0xd8] sm:$0xff]   ;;  %v975_v17 = vld [vmem:[#allocation6 + $0xe0] sm:$0xff]   ;;  %v978_v20 = vld [vmem:[#allocation6 + $0x68] sm:$0xff]   ;;  %p1084_p5 = por %p1083_p4, %p1082_p3 }
  0x2d   :  { %v972_v14 = vld [vmem:[#allocation6 + $0x18] sm:$0xff]   ;;  %v976_v18 = vld [vmem:[#allocation6 + $0x20] sm:$0xff]   ;;  %v979_v21 = vld [vmem:[#allocation6 + $0xe8] sm:$0xff]  }
  0x2e   :  { %834 = vmatpush3.bf16.msra.mxu0 %v964_v6  ;;  %v973_v15 = vld [vmem:[#allocation6 + $0x98] sm:$0xff]   ;;  %v977_v19 = vld [vmem:[#allocation6 + $0xa0] sm:$0xff]   ;;  %v980_v22 = vld [vmem:[#allocation6 + $0x28] sm:$0xff]   ;;  %p1085_p6 = pnand %p1084_p5, %p1078_p2 }
  0x2f   :  { %868 = vmatpush3.bf16.msra.mxu1 %v965_v7  ;;  %835 = vmatprep.subr.bf16.mxu0 %v966_v8  ;;  %v981_v23 = vld [vmem:[#allocation6 + $0xa8] sm:$0xff]   ;;  %v982_v24 = vld [vmem:[#allocation6 + $0x70] sm:$0xff]   ;;  %v986_v28 = vld [vmem:[#allocation6 + $0x78] sm:$0xff]  }
  0x30   :  { %869 = vmatprep.subr.bf16.mxu1 %v967_v9  ;;  %v983_v25 = vld [vmem:[#allocation6 + $0xf0] sm:$0xff]   ;;  %v987_v29 = vld [vmem:[#allocation6 + $0xf8] sm:$0xff]   ;;  %v996_v36 = vld [vmem:[#allocation6 + $0x140] sm:$0xff]  }
  0x31   :  { %v984_v26 = vld [vmem:[#allocation6 + $0x30] sm:$0xff]   ;;  %v988_v30 = vld [vmem:[#allocation6 + $0x38] sm:$0xff]   ;;  %v997_v37 = vld [vmem:[#allocation6 + $0x100] sm:$0xff]  }
  0x32   :  { %836 = vmatpush3.bf16.msra.mxu0 %v968_v10  ;;  %v985_v27 = vld [vmem:[#allocation6 + $0xb0] sm:$0xff]   ;;  %v989_v31 = vld [vmem:[#allocation6 + $0xb8] sm:$0xff]   ;;  %v998_v38 = vld [vmem:[#allocation6 + $0x148] sm:$0xff]  }
  0x33   :  { %870 = vmatpush3.bf16.msra.mxu1 %v969_v11  ;;  %837 = vmatprep.subr.bf16.mxu0 %v970_v12  ;;  %v990_v32 = vld [vmem:[#allocation3] ss:$24 sps:$4 sm:$0xff]   ;;  %v992_v33 = vld [vmem:[#allocation3 + $0x4] ss:$24 sps:$4 sm:$0xff]   ;;  %v1002_v42 = vld [vmem:[#allocation3 + $0x34] ss:$24 sps:$4 sm:$0xff]  }
  0x34   :  { %871 = vmatprep.subr.bf16.mxu1 %v971_v13  ;;  %v993_v34 = vld [vmem:[#allocation3 + $0x8] ss:$24 sps:$4 sm:$0xff]   ;;  %v995_v35 = vld [vmem:[#allocation3 + $0xc] ss:$24 sps:$4 sm:$0xff]   ;;  %581 = vmatprep.mubr.bf16.mxu0 %v992_v33  ;;  %v999_v39 = vld [vmem:[#allocation6 + $0x108] sm:$0xff]  }
  0x35   :  { %638 = vmatprep.mubr.bf16.mxu1 %v995_v35  ;;  %v1000_v40 = vld [vmem:[#allocation6 + $0x150] sm:$0xff]   ;;  %v1004_v43 = vld [vmem:[#allocation3 + $0x3c] ss:$24 sps:$4 sm:$0xff]   ;;  %v1006_v44 = vld [vmem:[#allocation6 + $0x158] sm:$0xff]  }
  0x36   :  { %838 = vmatpush3.bf16.msra.mxu0 %v972_v14  ;;  %v1001_v41 = vld [vmem:[#allocation6 + $0x110] sm:$0xff]   ;;  %v1007_v45 = vld [vmem:[#allocation3 + $0x30] ss:$24 sps:$4 sm:$0xff]   ;;  %v1016_v54 = vld [vmem:[#allocation6 + $0x168] sm:$0xff]  }
  0x37   :  { %872 = vmatpush3.bf16.msra.mxu1 %v973_v15  ;;  %839 = vmatprep.subr.bf16.mxu0 %v974_v16  ;;  %v1008_v46 = vld [vmem:[#allocation3 + $0x38] ss:$24 sps:$4 sm:$0xff]   ;;  %v1009_v47 = vld [vmem:[#allocation6 + $0x118] sm:$0xff]   ;;  %v1012_v49 = vld [vmem:[#allocation3 + $0x64] ss:$24 sps:$4 sm:$0xff]  }
  0x38   :  { %873 = vmatprep.subr.bf16.mxu1 %v975_v17  ;;  %v1010_v48 = vld [vmem:[#allocation6 + $0x160] sm:$0xff]   ;;  %v1014_v50 = vld [vmem:[#allocation3 + $0x6c] ss:$24 sps:$4 sm:$0xff]   ;;  %v1017_v52 = vld [vmem:[#allocation3 + $0x60] ss:$24 sps:$4 sm:$0xff]  }
  0x39   :  { %v1011_v51 = vld [vmem:[#allocation6 + $0x120] sm:$0xff]   ;;  %v1018_v53 = vld [vmem:[#allocation3 + $0x68] ss:$24 sps:$4 sm:$0xff]   ;;  %v1019_v55 = vld [vmem:[#allocation6 + $0x128] sm:$0xff]  }
  0x3a   :  { %840 = vmatpush3.bf16.msra.mxu0 %v976_v18  ;;  %v1020_v56 = vld [vmem:[#allocation6 + $0x170] sm:$0xff]   ;;  %v1026_v57 = vld [vmem:[#allocation3 + $0x14] ss:$24 sps:$4 sm:$0xff]   ;;  %v1024_v62 = vld [vmem:[#allocation3 + $0x10] ss:$24 sps:$4 sm:$0xff]  }
  0x3b   :  { %874 = vmatpush3.bf16.msra.mxu1 %v977_v19  ;;  %841 = vmatprep.subr.bf16.mxu0 %v978_v20  ;;  %v1021_v58 = vld [vmem:[#allocation6 + $0x130] sm:$0xff]   ;;  %v1022_v60 = vld [vmem:[#allocation6 + $0x178] sm:$0xff]  }
  0x3c   :  { %875 = vmatprep.subr.bf16.mxu1 %v979_v21  ;;  %v1029_v59 = vld [vmem:[#allocation3 + $0x44] ss:$24 sps:$4 sm:$0xff]   ;;  %v1023_v61 = vld [vmem:[#allocation6 + $0x138] sm:$0xff]   ;;  %v1027_v63 = vld [vmem:[#allocation3 + $0x40] ss:$24 sps:$4 sm:$0xff]  }
  0x3d   :  { %v1030_v0 = vld [vmem:[#allocation3 + $0x74] ss:$24 sps:$4 sm:$0xff]   ;;  %v1032_v1 = vld [vmem:[#allocation3 + $0x70] ss:$24 sps:$4 sm:$0xff]  }
  0x3e   :  { %842 = vmatpush3.bf16.msra.mxu0 %v980_v22 }
  0x3f   :  { %876 = vmatpush3.bf16.msra.mxu1 %v981_v23  ;;  %843 = vmatprep.subr.bf16.mxu0 %v982_v24 }
  0x40   :  { %877 = vmatprep.subr.bf16.mxu1 %v983_v25 }
  0x42   :  { %844 = vmatpush3.bf16.msra.mxu0 %v984_v26 }
  0x43   :  { %878 = vmatpush3.bf16.msra.mxu1 %v985_v27  ;;  %845 = vmatprep.subr.bf16.mxu0 %v986_v28 }
  0x44   :  { %879 = vmatprep.subr.bf16.mxu1 %v987_v29 }
  0x46   :  { %846 = vmatpush3.bf16.msra.mxu0 %v988_v30 }
  0x47   :  { %880 = vmatpush3.bf16.msra.mxu1 %v989_v31  ;;  %899 = vmatprep.subr.bf16.mxu0 %v996_v36 }
  0x48   :  { %933 = vmatprep.subr.bf16.mxu1 %v996_v36 }
  0x49   :  { %582 = vmatmul.mubr.bf16.vlgmr.msra.gmra.mrb[0].mxu0 %v990_v32 }
  0x4a   :  { %639 = vmatmul.mubr.bf16.vlgmr.msra.gmra.mrb[0].mxu1 %v993_v34  ;;  %900 = vmatpush3.bf16.msra.mxu0 %v997_v37 }
  0x4b   :  { %941 = vmatpush3.bf16.msra.mxu1 %v997_v37  ;;  %901 = vmatprep.subr.bf16.mxu0 %v998_v38 }
  0x4c   :  { %934 = vmatprep.subr.bf16.mxu1 %v998_v38  ;;  %589 = vmatprep.mubr.bf16.mxu0 %v1002_v42 }
  0x4d   :  { %646 = vmatprep.mubr.bf16.mxu1 %v1004_v43 }
  0x4e   :  { %902 = vmatpush3.bf16.msra.mxu0 %v999_v39 }
  0x4f   :  { %942 = vmatpush3.bf16.msra.mxu1 %v999_v39  ;;  %903 = vmatprep.subr.bf16.mxu0 %v1000_v40 }
  0x50   :  { %935 = vmatprep.subr.bf16.mxu1 %v1000_v40 }
  0x51   :  { %590 = vmatmul.mubr.bf16.gmra.mrb[4].mxu0 %v1007_v45 }
  0x52   :  { %904 = vmatpush3.bf16.msra.mxu0 %v1001_v41  ;;  %647 = vmatmul.mubr.bf16.gmra.mrb[4].mxu1 %v1008_v46 }
  0x53   :  { %943 = vmatpush3.bf16.msra.mxu1 %v1001_v41  ;;  %905 = vmatprep.subr.bf16.mxu0 %v1006_v44 }
  0x54   :  { %936 = vmatprep.subr.bf16.mxu1 %v1006_v44  ;;  %597 = vmatprep.mubr.bf16.mxu0 %v1012_v49 }
  0x55   :  { %654 = vmatprep.mubr.bf16.mxu1 %v1014_v50 }
  0x56   :  { %906 = vmatpush3.bf16.msra.mxu0 %v1009_v47 }
  0x57   :  { %944 = vmatpush3.bf16.msra.mxu1 %v1009_v47  ;;  %907 = vmatprep.subr.bf16.mxu0 %v1010_v48 }
  0x58   :  { %937 = vmatprep.subr.bf16.mxu1 %v1010_v48 }
  0x59   :  { %598 = vmatmul.mubr.bf16.gmra.mrb[8].mxu0 %v1017_v52 }
  0x5a   :  { %908 = vmatpush3.bf16.msra.mxu0 %v1011_v51  ;;  %655 = vmatmul.mubr.bf16.gmra.mrb[8].mxu1 %v1018_v53 }
  0x5b   :  { %945 = vmatpush3.bf16.msra.mxu1 %v1011_v51  ;;  %909 = vmatprep.subr.bf16.mxu0 %v1016_v54 }
  0x5c   :  { %938 = vmatprep.subr.bf16.mxu1 %v1016_v54  ;;  %695 = vmatprep.mubr.bf16.mxu0 %v1026_v57 }
  0x5d   :  { %703 = vmatprep.mubr.bf16.mxu1 %v1029_v59 }
  0x5e   :  { %910 = vmatpush3.bf16.msra.mxu0 %v1019_v55 }
  0x5f   :  { %946 = vmatpush3.bf16.msra.mxu1 %v1019_v55  ;;  %911 = vmatprep.subr.bf16.mxu0 %v1020_v56 }
  0x60   :  { %939 = vmatprep.subr.bf16.mxu1 %v1020_v56 }
  0x62   :  { %912 = vmatpush3.bf16.msra.mxu0 %v1021_v58 }
  0x63   :  { %947 = vmatpush3.bf16.msra.mxu1 %v1021_v58  ;;  %913 = vmatprep.subr.bf16.mxu0 %v1022_v60 }
  0x64   :  { %940 = vmatprep.subr.bf16.mxu1 %v1022_v60 }
  0x66   :  { %914 = vmatpush3.bf16.msra.mxu0 %v1023_v61 }
  0x67   :  { %948 = vmatpush3.bf16.msra.mxu1 %v1023_v61 }
  0x69   :  { %696 = vmatmul.mubr.bf16.vlgmr.msra.gmra.mrb[12].mxu0 %v1024_v62 }
  0x6a   :  { %704 = vmatmul.mubr.bf16.vlgmr.msra.gmra.mrb[12].mxu1 %v1027_v63 }
  0x6b   :  { %711 = vmatprep.mubr.bf16.mxu1 %v1030_v0 }
  0x72   :  { %712 = vmatmul.mubr.bf16.gmra.mrb[16].mxu1 %v1032_v1 }
 0x11c   :  { %v847_v2 = vpop.f32.mrb[0].mxu0 }
 0x11d   :  { %v881_v3 = vpop.f32.mrb[0].mxu1  ;;  %v848_v4 = vpop.f32.mrb[1].mxu0 }
 0x11e   :  { %v849_v5 = vadd.f32 %v848_v4, %v847_v2  ;;  %v882_v6 = vpop.f32.mrb[1].mxu1  ;;  %v850_v7 = vpop.f32.mrb[2].mxu0 }
 0x11f   :  { %v883_v8 = vadd.f32 %v882_v6, %v881_v3  ;;  %v884_v9 = vpop.f32.mrb[2].mxu1  ;;  %v851_v10 = vpop.f32.mrb[3].mxu0 }
 0x120   :  { %v852_v11 = vadd.f32 %v851_v10, %v850_v7  ;;  %v885_v12 = vpop.f32.mrb[3].mxu1 }
 0x121   :  { %v641_v13 = vadd.f32 %v883_v8, %v849_v5  ;;  %v886_v14 = vadd.f32 %v885_v12, %v884_v9 }
 0x123   :  { %v644_v15 = vadd.f32 %v886_v14, %v852_v11 }
 0x124   :  { %v853_v16 = vpop.f32.mrb[4].mxu0 }
 0x125   :  { %v887_v17 = vpop.f32.mrb[4].mxu1  ;;  %v854_v18 = vpop.f32.mrb[5].mxu0 }
 0x126   :  { %v855_v19 = vadd.f32 %v854_v18, %v853_v16  ;;  %v888_v20 = vpop.f32.mrb[5].mxu1  ;;  %v856_v21 = vpop.f32.mrb[6].mxu0 }
 0x127   :  { %v889_v22 = vadd.f32 %v888_v20, %v887_v17  ;;  %v890_v23 = vpop.f32.mrb[6].mxu1  ;;  %v857_v24 = vpop.f32.mrb[7].mxu0 }
 0x128   :  { %v858_v25 = vadd.f32 %v857_v24, %v856_v21  ;;  %v891_v26 = vpop.f32.mrb[7].mxu1 }
 0x129   :  { %v649_v27 = vadd.f32 %v889_v22, %v855_v19  ;;  %v892_v28 = vadd.f32 %v891_v26, %v890_v23 }
 0x12b   :  { %v652_v29 = vadd.f32 %v892_v28, %v858_v25 }
 0x12c   :  { %v859_v30 = vpop.f32.mrb[8].mxu0 }
 0x12d   :  { %v893_v31 = vpop.f32.mrb[8].mxu1  ;;  %v860_v32 = vpop.f32.mrb[9].mxu0 }
 0x12e   :  { %v861_v33 = vadd.f32 %v860_v32, %v859_v30  ;;  %v894_v34 = vpop.f32.mrb[9].mxu1  ;;  %v862_v35 = vpop.f32.mrb[10].mxu0 }
 0x12f   :  { %v895_v36 = vadd.f32 %v894_v34, %v893_v31  ;;  %v896_v37 = vpop.f32.mrb[10].mxu1  ;;  %v863_v38 = vpop.f32.mrb[11].mxu0 }
 0x130   :  { %v864_v39 = vadd.f32 %v863_v38, %v862_v35  ;;  %v897_v40 = vpop.f32.mrb[11].mxu1 }
 0x131   :  { %v657_v41 = vadd.f32 %v895_v36, %v861_v33  ;;  %v898_v42 = vadd.f32 %v897_v40, %v896_v37 }
 0x133   :  { %v660_v43 = vadd.f32 %v898_v42, %v864_v39 }
 0x13c   :  { %v915_v44 = vpop.f32.mrb[12].mxu0 }
 0x13d   :  { %v921_v45 = vpop.f32.mrb[12].mxu1  ;;  %v916_v46 = vpop.f32.mrb[13].mxu0 }
 0x13e   :  { %v917_v47 = vadd.f32 %v916_v46, %v915_v44  ;;  %v922_v48 = vpop.f32.mrb[13].mxu1  ;;  %v918_v49 = vpop.f32.mrb[14].mxu0 }
 0x13f   :  { %v923_v50 = vadd.f32 %v922_v48, %v921_v45  ;;  %v924_v51 = vpop.f32.mrb[14].mxu1  ;;  %v919_v52 = vpop.f32.mrb[15].mxu0 }
 0x140   :  { %v698_v53 = vadd.f32 %v917_v47, %v641_v13  ;;  %v920_v54 = vadd.f32 %v919_v52, %v918_v49  ;;  %v925_v55 = vpop.f32.mrb[15].mxu1 }
 0x141   :  { %v706_v56 = vadd.f32 %v923_v50, %v649_v27  ;;  %v926_v57 = vadd.f32 %v925_v55, %v924_v51 }
 0x142   :  { %741 = vst [vmem:[#allocation8] sm:$0xff] %v698_v53  ;;  %v701_v58 = vadd.f32 %v920_v54, %v644_v15 }
 0x143   :  { %743 = vst [vmem:[#allocation8 + $0x10] sm:$0xff] %v706_v56  ;;  %v709_v59 = vadd.f32 %v926_v57, %v652_v29 }
 0x144   :  { %742 = vst [vmem:[#allocation8 + $0x8] sm:$0xff] %v701_v58 }
 0x145   :  { %744 = vst [vmem:[#allocation8 + $0x18] sm:$0xff] %v709_v59  ;;  %v927_v60 = vpop.f32.mrb[16].mxu1 }
 0x146   :  { %v928_v61 = vpop.f32.mrb[17].mxu1 }
 0x147   :  { %v929_v62 = vadd.f32 %v928_v61, %v927_v60  ;;  %v930_v63 = vpop.f32.mrb[18].mxu1 }
 0x148   :  { %v931_v0 = vpop.f32.mrb[19].mxu1 }
 0x149   :  { %v714_v1 = vadd.f32 %v929_v62, %v657_v41  ;;  %v932_v2 = vadd.f32 %v931_v0, %v930_v63 }
 0x14b   :  { %745 = vst [vmem:[#allocation8 + $0x20] sm:$0xff] %v714_v1  ;;  %v717_v3 = vadd.f32 %v932_v2, %v660_v43 }
 0x14d   :  { %746 = vst [vmem:[#allocation8 + $0x28] sm:$0xff] %v717_v3 }
 0x14e   :  { %1088 = shalt.err (!%p1085_p6)
}
 0x14f   :  { %s1089_s12 = scalar_lea.hbm %s1167_s2, 768 }
 0x150   :  { %p1090_p7 = scmp.ne.s32.totalorder %s1167_s2, %s1089_s12  ;;  %p1093_p8 = scmp.lt.u32.totalorder %s1089_s12, %s1167_s2 }
 0x152   :  { %p1095_p9 = pnand %p1093_p8, %p1090_p7 }
 0x154   :  { %1098 = shalt.err (!%p1095_p9)
}
 0x155   :  { %s1112_s17 = smov 128   ;;  %s1113_s18 = smov 8  }
 0x156   :  { %758 = dma.vmem_to_hbm [thread:$0]  %s753_s8, 768, %s1167_s2, [#allocation5], %s1112_s17, %s1112_s17, %s1113_s18  }
 0x157   :  { %1103 = dma.done.wait [#allocation5], 768  }
 0x158   :  { %1104 = vsyncadd [#allocation5], 4294966528 }
 0x159   :  { %762 = vsyncpa [#allocation4], 1 }
 0x15a   :  { %763 = vsyncpa [#allocation7], 1 }
 0x15b   :  { %764 = vsyncpa [#allocation5], 1 }

</bundles_post_ra>
